<compile_context>
chip_gen: v5e
topology: v5e:2x2
jax: 0.10.0
libtpu: 0.0.40
codegen_flags: <defaults>
</compile_context>

<pallas_src>
from functools import partial

import numpy as np
import jax
import jax.numpy as jnp
from jax.experimental import pallas as pl
from jax.experimental.pallas import tpu as pltpu


# ----------------------------------------------------------------------------
# Pallas kernel: softmax over the class (sublane) axis of a lane-dense
# (Bt, class_num, Nt) block. N lives on the 128-lane axis.
def _softmax_kernel(x_ref, o_ref):
    x = x_ref[...].astype(jnp.float32)            # (Bt, C, Nt)
    C = x.shape[1]

    # Unrolled max over the small class/sublane axis -> (Bt, 1, Nt).
    m = x[:, 0:1, :]
    for c in range(1, C):
        m = jnp.maximum(m, x[:, c:c + 1, :])

    e = jnp.exp(x - m)                            # EUP; every lane useful

    # Unrolled sum over the class axis -> (Bt, 1, Nt).
    s = e[:, 0:1, :]
    for c in range(1, C):
        s = s + e[:, c:c + 1, :]

    # Exact divide keeps rtol=1e-5 vs jax.nn.softmax (pl.reciprocal(approx=True)
    # would relax accuracy; only worth it if VALU ever becomes the binding slot).
    o_ref[...] = (e / s).astype(o_ref.dtype)


def _n_tile(N: int, max_tile: int = 4096) -> int:
    """Largest multiple of 128 that divides N, capped at max_tile (else full N)."""
    if N % 128 != 0:
        return N
    nt = min(max_tile, N)
    nt -= nt % 128
    while nt > 128 and N % nt != 0:
        nt -= 128
    return nt if N % nt == 0 else N


@partial(jax.jit, static_argnums=(1,))
def pallas_class_softmax(predicts: jax.Array, class_num: int) -> jax.Array:
    """predicts: (B, N, 4 + class_num) -> class probabilities, shape (B, class_num, N).

    Only the softmaxed class slab is produced (lane-dense layout: classes on the
    sublane axis, default boxes on the lane axis). Location columns stay in
    `predicts` untouched and are consumed on host.
    """
    B, N, D = predicts.shape
    C = class_num

    # Layout plumbing (XLA): slice the class slab and put N on the lane axis.
    cls_t = jnp.swapaxes(predicts[:, :, D - C:], 1, 2)           # (B, C, N)

    itemsize = jnp.dtype(cls_t.dtype).itemsize
    nt = _n_tile(N)
    n_tiles = N // nt

    # Fold batch rows per block up to ~1 MiB, but keep >= 2 grid steps when
    # possible so both v7x TensorCores have independent work.
    row_bytes = C * nt * itemsize
    bt = max(1, min(B, (1 << 20) // max(row_bytes, 1)))
    while B % bt:
        bt -= 1
    while bt > 1 and (B // bt) * n_tiles < 2:
        bt -= 1
        while B % bt:
            bt -= 1

    grid = (B // bt, n_tiles)
    block = (bt, C, nt)

    return pl.pallas_call(
        _softmax_kernel,
        out_shape=jax.ShapeDtypeStruct((B, C, N), predicts.dtype),
        grid_spec=pltpu.PrefetchScalarGridSpec(
            num_scalar_prefetch=0,
            grid=grid,
            in_specs=[pl.BlockSpec(block, lambda b, n: (b, 0, n))],
            out_specs=pl.BlockSpec(block, lambda b, n: (b, 0, n)),
        ),
        compiler_params=pltpu.CompilerParams(
            dimension_semantics=("parallel", "parallel"),
            vmem_limit_bytes=32 * 1024 * 1024,
        ),
    )(cls_t)


# ----------------------------------------------------------------------------
# filter_func: the PyTorch module injects a cv2-based NMS routine here.
# TODO(synk): real IoU-based non-maximum-suppression filter_func not ported;
# this stand-in keeps every box above threshold, sorted by confidence.
def simple_filter_func(filtered_pred: np.ndarray, val_config):
    # filtered_pred: (K, 5) = (cx, cy, w, h, conf)
    confs = filtered_pred[:, -1]
    order = np.argsort(-confs)
    return order, confs[order], filtered_pred[order, :4]


class InferenceBoxJax:
    """JAX/Pallas re-implementation of ssd.core.inference.InferenceBox."""

    def __init__(self, class_nums_with_background, filter_func, conf_threshold=0.01):
        self.class_nums_with_background = class_nums_with_background
        self.filter_func = filter_func
        self._conf_threshold = conf_threshold

    @property
    def conf_threshold(self):
        return self._conf_threshold

    def __call__(self, predicts: jax.Array, conf_threshold=None):
        batch_num = predicts.shape[0]
        class_num = self.class_nums_with_background
        loc_num = predicts.shape[2] - class_num                  # = 4
        ret_num = loc_num + 1 + 1                                # = 6

        # --- hot path on TPU: softmax over the class-score columns ---
        probs = pallas_class_softmax(predicts, class_num)        # (B, C, N)
        probs = np.asarray(jax.block_until_ready(probs))
        locs_all = np.asarray(predicts)[:, :, :loc_num]          # untouched locations

        # Matches the PyTorch reference (note: an explicit conf_threshold=0.0
        # falls back to the default — same truthiness behaviour as the reference).
        conf_threshold = conf_threshold if conf_threshold else self.conf_threshold

        ret_boxes = []
        for b in range(batch_num):
            ret_box = []
            locs = locs_all[b]                                   # (N, 4)
            for c in range(class_num - 1):                       # last column = background
                conf_c = probs[b, c]                             # (N,)
                indicator = conf_c > conf_threshold
                if indicator.sum() == 0:
                    continue
                filtered_pred = np.concatenate(
                    (locs[indicator], conf_c[indicator][:, None]), axis=1)
                inferred_indices, inferred_confs, inferred_locs = \
                    self.filter_func(filtered_pred, None)
                if inferred_indices.size == 0:
                    continue
                flag = np.broadcast_to([c], shape=(inferred_indices.size, 1)).astype(np.float32)
                ret_box += [np.concatenate(
                    (flag, inferred_confs[:, None], inferred_locs), axis=1)]
            if len(ret_box) == 0:
                ret_boxes += [np.ones((1, ret_num), dtype=np.float32) * np.nan]
            else:
                ret_boxes += [np.concatenate(ret_box, axis=0)]
        return ret_boxes


if __name__ == "__main__":
    # Small, module-consistent shapes:
    #   batch=2, default boxes=512 (multiple of 128), class_num (with bg)=5 -> D=9
    B, N, CLS = 2, 512, 5
    D = 4 + CLS
    key = jax.random.PRNGKey(0)
    predicts = jax.random.normal(key, (B, N, D), dtype=jnp.float32)

    # Sanity check the Pallas softmax against the JAX reference.
    out = jax.block_until_ready(pallas_class_softmax(predicts, CLS))   # (B, CLS, N)
    ref = jax.nn.softmax(predicts[:, :, -CLS:], axis=-1)               # (B, N, CLS)
    np.testing.assert_allclose(np.asarray(jnp.swapaxes(out, 1, 2)),
                               np.asarray(ref), rtol=1e-5, atol=1e-5)

    box = InferenceBoxJax(class_nums_with_background=CLS,
                          filter_func=simple_filter_func,
                          conf_threshold=0.01)
    ret_boxes = box(predicts)

    assert len(ret_boxes) == B
    for rb in ret_boxes:
        assert rb.ndim == 2 and rb.shape[1] == 6  # (class idx, conf, cx, cy, w, h)

    print("KERNEL_OK")
</pallas_src>

<mosaic_0001>
module attributes {stable_mosaic.version = 11 : i64} {
  func.func @_softmax_kernel(%arg0: i32, %arg1: i32, %arg2: memref<1x5x512xf32, #tpu.memory_space<vmem>>, %arg3: memref<1x5x512xf32, #tpu.memory_space<vmem>>) attributes {dimension_semantics = [#tpu.dimension_semantics<parallel>, #tpu.dimension_semantics<parallel>], iteration_bounds = array<i64: 2, 1>, scalar_prefetch = 0 : i64, scratch_operands = 0 : i64, tpu.core_type = #tpu.core_type<tc>, window_params = [{transform_indices = @transform_0, window_bounds = array<i64: 1, 5, 512>}, {transform_indices = @transform_1, window_bounds = array<i64: 1, 5, 512>}]} {
    %c0 = arith.constant 0 : index
    %c0_0 = arith.constant 0 : index
    %c0_1 = arith.constant 0 : index
    %0 = vector.load %arg2[%c0, %c0_0, %c0_1] : memref<1x5x512xf32, #tpu.memory_space<vmem>>, vector<1x5x512xf32>
    %1 = vector.extract_strided_slice %0 {offsets = [0, 0, 0], sizes = [1, 1, 512], strides = [1, 1, 1]} : vector<1x5x512xf32> to vector<1x1x512xf32>
    %2 = vector.extract_strided_slice %0 {offsets = [0, 1, 0], sizes = [1, 1, 512], strides = [1, 1, 1]} : vector<1x5x512xf32> to vector<1x1x512xf32>
    %3 = arith.maximumf %1, %2 : vector<1x1x512xf32>
    %4 = vector.extract_strided_slice %0 {offsets = [0, 2, 0], sizes = [1, 1, 512], strides = [1, 1, 1]} : vector<1x5x512xf32> to vector<1x1x512xf32>
    %5 = arith.maximumf %3, %4 : vector<1x1x512xf32>
    %6 = vector.extract_strided_slice %0 {offsets = [0, 3, 0], sizes = [1, 1, 512], strides = [1, 1, 1]} : vector<1x5x512xf32> to vector<1x1x512xf32>
    %7 = arith.maximumf %5, %6 : vector<1x1x512xf32>
    %8 = vector.extract_strided_slice %0 {offsets = [0, 4, 0], sizes = [1, 1, 512], strides = [1, 1, 1]} : vector<1x5x512xf32> to vector<1x1x512xf32>
    %9 = arith.maximumf %7, %8 : vector<1x1x512xf32>
    %10 = vector.broadcast %9 : vector<1x1x512xf32> to vector<1x5x512xf32>
    %11 = arith.subf %0, %10 : vector<1x5x512xf32>
    %12 = math.exp %11 : vector<1x5x512xf32>
    %13 = vector.extract_strided_slice %12 {offsets = [0, 0, 0], sizes = [1, 1, 512], strides = [1, 1, 1]} : vector<1x5x512xf32> to vector<1x1x512xf32>
    %14 = vector.extract_strided_slice %12 {offsets = [0, 1, 0], sizes = [1, 1, 512], strides = [1, 1, 1]} : vector<1x5x512xf32> to vector<1x1x512xf32>
    %15 = arith.addf %13, %14 : vector<1x1x512xf32>
    %16 = vector.extract_strided_slice %12 {offsets = [0, 2, 0], sizes = [1, 1, 512], strides = [1, 1, 1]} : vector<1x5x512xf32> to vector<1x1x512xf32>
    %17 = arith.addf %15, %16 : vector<1x1x512xf32>
    %18 = vector.extract_strided_slice %12 {offsets = [0, 3, 0], sizes = [1, 1, 512], strides = [1, 1, 1]} : vector<1x5x512xf32> to vector<1x1x512xf32>
    %19 = arith.addf %17, %18 : vector<1x1x512xf32>
    %20 = vector.extract_strided_slice %12 {offsets = [0, 4, 0], sizes = [1, 1, 512], strides = [1, 1, 1]} : vector<1x5x512xf32> to vector<1x1x512xf32>
    %21 = arith.addf %19, %20 : vector<1x1x512xf32>
    %22 = vector.broadcast %21 : vector<1x1x512xf32> to vector<1x5x512xf32>
    %23 = arith.divf %12, %22 : vector<1x5x512xf32>
    %c0_2 = arith.constant 0 : index
    %c0_3 = arith.constant 0 : index
    %c0_4 = arith.constant 0 : index
    %24 = vector.load %arg3[%c0_2, %c0_3, %c0_4] : memref<1x5x512xf32, #tpu.memory_space<vmem>>, vector<1x5x512xf32>
    tpu.vector_store %arg3[%c0_2, %c0_3, %c0_4], %23 {strides = array<i32>} : memref<1x5x512xf32, #tpu.memory_space<vmem>>, vector<1x5x512xf32>,
    return
  }
  func.func @transform_0(%arg0: i32, %arg1: i32) -> (i32, i32, i32) {
    %c0_i32 = arith.constant 0 : i32
    %c0_i32_0 = arith.constant 0 : i32
    return %arg0, %c0_i32, %arg1 : i32, i32, i32
  }
  func.func @transform_1(%arg0: i32, %arg1: i32) -> (i32, i32, i32) {
    %c0_i32 = arith.constant 0 : i32
    %c0_i32_0 = arith.constant 0 : i32
    return %arg0, %c0_i32, %arg1 : i32, i32, i32
  }
}

</mosaic_0001>

<bundles_post_ra>
// kernel: pallas_class_softmax.1
= control target key start
LH: loop header
LB: loop body
LE: loop exit
PB: predicated region body
PF: predicated region fallthrough
CT: control target
= control target key end

     0   :  { %s522_s6 = smov 0   ;;  %s524_s7 = smov 0   ;;  %s628_s0 = inlined_call_operand.vmem [shape: f32[2,5,512], index: 0, kind: input, shape index: {}]   ;;  %s629_s1 = inlined_call_operand.vmem [shape: f32[2,5,512], index: 1, kind: output, shape index: {}]  }
   0x1   :  { %s526_s8 = smov 0  }
   0x2 LB: > { %s23_s9 = sadd.s32 1, %s506_s7  ;;  %p439_p0 = scmp.ge.s32.totalorder %s510_s8, 1  ;;  %s510_s8 = sphi %s526_s8, %s11_s8   ;;  %s506_s7 = sphi %s524_s7, %s641_s7   ;;  %s502_s6 = sphi %s522_s6, %s640_s6  }
   0x3   : > { %p25_p1 = scmp.ge.s32.totalorder %s23_s9, 2  ;;  %p108_p2 = scmp.lt.s32.totalorder %s510_s8, 3 }
   0x5   : > { %s643_s9 = smov (%p25_p1, %s23_s9), 0  ;;  %p109_p3 = pnand %p439_p0, %p108_p2 }
   0x6   : > { %p137_p4 = scmp.lt.s32.totalorder (!%p109_p3), %s502_s6, 1 }
   0x7   : > { %112 = sbr.rel (%p109_p3) target bundleno = 74 (0x4a), region = 24 }
   0xc   : > { %s645_s6 = smov (!%p137_p4, %s502_s6), 1 }
   0xd   : > { %s446_s10 = sshll.u32 %s645_s6, 5 }
   0xe   : > { %s144_s13 = scalar_lea.vmem %s628_s0, %s446_s10  ;;  %s154_s16 = scalar_lea.vmem %s629_s1, %s446_s10 }
   0xf   : > { %v156_v0 = vld [vmem:[%s144_s13] sm:$0x1f]  ;;  %v157_v1 = vld [vmem:[%s144_s13 + $0x8] sm:$0x1f]  ;;  %v158_v2 = vld [vmem:[%s144_s13 + $0x10] sm:$0x1f] }
  0x10   : > { %v159_v3 = vld [vmem:[%s144_s13 + $0x18] sm:$0x1f]  ;;  %v164_v4 = vrot.slane %v156_v0, 1  ;;  %v165_v5 = vrot.slane %v157_v1, 1  ;;  %v166_v6 = vrot.slane %v158_v2, 1  ;;  %v176_v7 = vrot.slane %v156_v0, 2 }
  0x11   : > { %v167_v8 = vrot.slane %v159_v3, 1  ;;  %v177_v9 = vrot.slane %v157_v1, 2  ;;  %v178_v10 = vrot.slane %v158_v2, 2  ;;  %v179_v11 = vrot.slane %v159_v3, 2 }
  0x12   : > { %v172_v12 = vmax.f32 %v156_v0, %v164_v4  ;;  %v173_v13 = vmax.f32 %v157_v1, %v165_v5  ;;  %v174_v14 = vmax.f32 %v158_v2, %v166_v6  ;;  %v188_v15 = vrot.slane %v156_v0, 3 }
  0x13   : > { %v175_v16 = vmax.f32 %v159_v3, %v167_v8  ;;  %v189_v17 = vrot.slane %v157_v1, 3  ;;  %v190_v18 = vrot.slane %v158_v2, 3  ;;  %v191_v19 = vrot.slane %v159_v3, 3 }
  0x14   : > { %v184_v20 = vmax.f32 %v172_v12, %v176_v7  ;;  %v185_v21 = vmax.f32 %v173_v13, %v177_v9  ;;  %v186_v22 = vmax.f32 %v174_v14, %v178_v10  ;;  %v200_v23 = vrot.slane %v156_v0, 4 }
  0x15   : > { %v187_v24 = vmax.f32 %v175_v16, %v179_v11  ;;  %v201_v25 = vrot.slane %v157_v1, 4  ;;  %v202_v26 = vrot.slane %v158_v2, 4  ;;  %v203_v27 = vrot.slane %v159_v3, 4 }
  0x16   : > { %v196_v28 = vmax.f32 %v184_v20, %v188_v15  ;;  %v197_v29 = vmax.f32 %v185_v21, %v189_v17  ;;  %v198_v30 = vmax.f32 %v186_v22, %v190_v18 }
  0x17   : > { %v199_v31 = vmax.f32 %v187_v24, %v191_v19 }
  0x18   : > { %v208_v32 = vmax.f32 %v196_v28, %v200_v23  ;;  %v209_v33 = vmax.f32 %v197_v29, %v201_v25  ;;  %v210_v34 = vmax.f32 %v198_v30, %v202_v26 }
  0x19   : > { %v211_v35 = vmax.f32 %v199_v31, %v203_v27 }
  0x1a   : > { %v212_v36 = vperm.slane %v208_v32, 0  ;;  %v213_v37 = vperm.slane %v209_v33, 0  ;;  %v214_v38 = vperm.slane %v210_v34, 0 }
  0x1b   : > { %v215_v39 = vperm.slane %v211_v35, 0 }
  0x1c   : > { %v216_v40 = vsub.f32 %v156_v0, %v212_v36  ;;  %v217_v41 = vsub.f32 %v157_v1, %v213_v37  ;;  %v218_v42 = vsub.f32 %v158_v2, %v214_v38 }
  0x1d   : > { %v219_v43 = vsub.f32 %v159_v3, %v215_v39 }
  0x1e   : > { %v220_v44 = vmul.f32 1.442695, %v216_v40  ;;  %v222_v45 = vmul.f32 1.442695, %v217_v41  ;;  %v224_v46 = vmul.f32 1.442695, %v218_v42 }
  0x1f   : > { %v226_v47 = vmul.f32 1.442695, %v219_v43 }
  0x20   : > { %472 = vpow2.f32 %v220_v44 }
  0x21   : > { %474 = vpow2.f32 %v222_v45 }
  0x22   : > { %476 = vpow2.f32 %v224_v46 }
  0x23   : > { %478 = vpow2.f32 %v226_v47 }
  0x26   : > { %v548_v48 = vpop.eup %472 }
  0x27   : > { %v550_v49 = vpop.eup %474  ;;  %v232_v50 = vrot.slane %v548_v48, 1  ;;  %v244_v51 = vrot.slane %v548_v48, 2  ;;  %v256_v57 = vrot.slane %v548_v48, 3  ;;  %v268_v1 = vrot.slane %v548_v48, 4 }
  0x28   : > { %v554_v52 = vpop.eup %476  ;;  %v233_v53 = vrot.slane %v550_v49, 1  ;;  %v245_v54 = vrot.slane %v550_v49, 2  ;;  %v257_v61 = vrot.slane %v550_v49, 3  ;;  %v269_v5 = vrot.slane %v550_v49, 4 }
  0x29   : > { %v558_v55 = vpop.eup %478  ;;  %v240_v56 = vadd.f32 %v548_v48, %v232_v50  ;;  %v234_v58 = vrot.slane %v554_v52, 1  ;;  %v246_v59 = vrot.slane %v554_v52, 2  ;;  %v258_v3 = vrot.slane %v554_v52, 3 }
  0x2a   : > { %v241_v60 = vadd.f32 %v550_v49, %v233_v53  ;;  %v235_v62 = vrot.slane %v558_v55, 1  ;;  %v247_v63 = vrot.slane %v558_v55, 2  ;;  %v259_v7 = vrot.slane %v558_v55, 3 }
  0x2b   : > { %v252_v0 = vadd.f32 %v244_v51, %v240_v56  ;;  %v242_v2 = vadd.f32 %v554_v52, %v234_v58  ;;  %v270_v10 = vrot.slane %v554_v52, 4  ;;  %v271_v13 = vrot.slane %v558_v55, 4 }
  0x2c   : > { %v253_v4 = vadd.f32 %v245_v54, %v241_v60  ;;  %v243_v6 = vadd.f32 %v558_v55, %v235_v62 }
  0x2d   : > { %v264_v8 = vadd.f32 %v256_v57, %v252_v0  ;;  %v254_v9 = vadd.f32 %v246_v59, %v242_v2 }
  0x2e   : > { %v265_v11 = vadd.f32 %v257_v61, %v253_v4  ;;  %v255_v12 = vadd.f32 %v247_v63, %v243_v6 }
  0x2f   : > { %v276_v14 = vadd.f32 %v268_v1, %v264_v8  ;;  %v266_v15 = vadd.f32 %v258_v3, %v254_v9 }
  0x30   : > { %v277_v16 = vadd.f32 %v269_v5, %v265_v11  ;;  %v267_v17 = vadd.f32 %v259_v7, %v255_v12 }
  0x31   : > { %v280_v18 = vperm.slane %v276_v14, 0  ;;  %v278_v19 = vadd.f32 %v270_v10, %v266_v15 }
  0x32   : > { %v281_v20 = vperm.slane %v277_v16, 0  ;;  %v279_v21 = vadd.f32 %v271_v13, %v267_v17 }
  0x33   : > { %480 = vrcp.f32 %v280_v18  ;;  %v282_v22 = vperm.slane %v278_v19, 0  ;;  %v293_v24 = vand.u32 2147483647, %v280_v18  ;;  %v295_v25 = vand.u32 2147483648, %v280_v18 }
  0x34   : > { %482 = vrcp.f32 %v281_v20  ;;  %v283_v23 = vperm.slane %v279_v21, 0  ;;  %v308_v27 = vand.u32 2147483647, %v281_v20  ;;  %v310_v28 = vand.u32 2147483648, %v281_v20 }
  0x35   : > { %484 = vrcp.f32 %v282_v22  ;;  %vm289_vm0 = vweird.f32 %v280_v18  ;;  %vm304_vm1 = vweird.f32 %v281_v20  ;;  %vm576_vm3 = vcmp.eq.f32.partialorder %v293_v24, 8.507059e+37 }
  0x36   : > { %486 = vrcp.f32 %v283_v23  ;;  %v296_v34 = vor.u32 1.1754944e-38, %v295_v25  ;;  %vm580_vm5 = vcmp.eq.f32.partialorder %v308_v27, 8.507059e+37  ;;  %v311_v38 = vor.u32 1.1754944e-38, %v310_v28 }
  0x37   : > { %vm319_vm6 = vweird.f32 %v282_v22  ;;  %v323_v42 = vand.u32 2147483647, %v282_v22  ;;  %v325_v45 = vand.u32 2147483648, %v282_v22  ;;  %vm334_vm8 = vweird.f32 %v283_v23 }
  0x38   : > { %v340_v53 = vand.u32 2147483648, %v283_v23  ;;  %v338_v57 = vand.u32 2147483647, %v283_v23 }
  0x39   : > { %v481_v26 = vpop.eup %480  ;;  %vm596_vm12 = vcmp.eq.f32.partialorder %v323_v42, 8.507059e+37  ;;  %v326_v63 = vor.u32 1.1754944e-38, %v325_v45 }
  0x3a   : > { %v483_v29 = vpop.eup %482  ;;  %v285_v30 = vmul.f32 %v481_v26, %v280_v18  ;;  %vm290_vm2 = vweird.f32 %v481_v26  ;;  %v341_v4 = vor.u32 1.1754944e-38, %v340_v53  ;;  %vm339_vm15 = vcmp.eq.f32.partialorder %v338_v57, 8.507059e+37 }
  0x3b   : > { %v300_v31 = vmul.f32 %v483_v29, %v281_v20  ;;  %v485_v35 = vpop.eup %484  ;;  %vm305_vm4 = vweird.f32 %v483_v29  ;;  %vm585_vm7 = vmor %vm289_vm0, %vm290_vm2 }
  0x3c   : > { %v286_v32 = vsub.f32 1.0, %v285_v30  ;;  %v487_v39 = vpop.eup %486  ;;  %v315_v41 = vmul.f32 %v485_v35, %v282_v22  ;;  %vm590_vm9 = vmor %vm304_vm1, %vm305_vm4  ;;  %vm320_vm10 = vweird.f32 %v485_v35 }
  0x3d   : > { %v301_v36 = vsub.f32 1.0, %v300_v31  ;;  %v330_v46 = vmul.f32 %v487_v39, %v283_v23  ;;  %vm335_vm11 = vweird.f32 %v487_v39  ;;  %vm321_vm13 = vmor %vm319_vm6, %vm320_vm10 }
  0x3e   : > { %v287_v40 = vmul.f32 %v481_v26, %v286_v32  ;;  %v316_v51 = vsub.f32 1.0, %v315_v41  ;;  %vm336_vm14 = vmor %vm334_vm8, %vm335_vm11 }
  0x3f   : > { %v302_v44 = vmul.f32 %v483_v29, %v301_v36  ;;  %v331_v56 = vsub.f32 1.0, %v330_v46 }
  0x40   : > { %v288_v47 = vadd.f32 %v481_v26, %v287_v40  ;;  %v317_v59 = vmul.f32 %v485_v35, %v316_v51 }
  0x41   : > { %v303_v54 = vadd.f32 %v483_v29, %v302_v44  ;;  %v332_v0 = vmul.f32 %v487_v39, %v331_v56 }
  0x42   : > { %v292_v58 = vsel %vm585_vm7, %v481_v26, %v288_v47  ;;  %v318_v3 = vadd.f32 %v485_v35, %v317_v59 }
  0x43   : > { %v297_v61 = vsel %vm576_vm3, %v296_v34, %v292_v58  ;;  %v307_v62 = vsel %vm590_vm9, %v483_v29, %v303_v54  ;;  %v333_v6 = vadd.f32 %v487_v39, %v332_v0 }
  0x44   : > { %v298_v1 = vmul.f32 %v548_v48, %v297_v61  ;;  %v312_v2 = vsel %vm580_vm5, %v311_v38, %v307_v62  ;;  %v322_v7 = vsel %vm321_vm13, %v485_v35, %v318_v3 }
  0x45   : > { %v313_v5 = vmul.f32 %v550_v49, %v312_v2  ;;  %v327_v8 = vsel %vm596_vm12, %v326_v63, %v322_v7  ;;  %v337_v9 = vsel %vm336_vm14, %v487_v39, %v333_v6 }
  0x46   : > { %344 = vst [vmem:[%s154_s16] sm:$0x1f] %v298_v1  ;;  %v328_v48 = vmul.f32 %v554_v52, %v327_v8  ;;  %v342_v10 = vsel %vm339_vm15, %v341_v4, %v337_v9 }
  0x47   : > { %345 = vst [vmem:[%s154_s16 + $0x8] sm:$0x1f] %v313_v5  ;;  %v343_v11 = vmul.f32 %v558_v55, %v342_v10 }
  0x48   : > { %346 = vst [vmem:[%s154_s16 + $0x10] sm:$0x1f] %v328_v48 }
  0x49   : > { %347 = vst [vmem:[%s154_s16 + $0x18] sm:$0x1f] %v343_v11 }
  0x4a PF: > { %s11_s8 = sadd.s32 1, %s510_s8   ;;  %s640_s6 = smov %s506_s7 }
  0x4b   : > { %p8_p5 = scmp.ge.s32.totalorder %s11_s8, 4   ;;  %s641_s7 = smov %s643_s9 }
  0x4d   :  { %10 = sbr.rel (!%p8_p5) target bundleno = 2 (0x2), region = 54 }

</bundles_post_ra>
